<compile_context>
chip_gen: v7x
topology: tpu7x:2x2x1
jax: 0.10.0
libtpu: 0.0.40
codegen_flags: <defaults>
</compile_context>

<pallas_src>
import functools

import jax
import jax.numpy as jnp
from jax.experimental import pallas as pl
from jax.experimental.pallas import tpu as pltpu


def _fused_loss_kernel(
    mel_p_ref, mel_t_ref,
    dur_p_ref, len_t_ref,
    en_p_ref, en_t_ref,
    pi_p_ref, pi_t_ref,
    out_ref, acc_ref,
    *,
    block_rows: int,
    inner_blocks: int,
    total_blocks: int,
    mel_rows: int,
    dur_numel: float,
    en_numel: float,
    pi_numel: float,
    need_mask: bool,
    has_dup: bool,
):
    c = pl.program_id(0)          # core-parallel axis
    i = pl.program_id(1)          # row-block (reduction) axis
    gidx = c * inner_blocks + i   # global (unclamped) block index

    @pl.when(i == 0)
    def _init():
        acc_ref[...] = jnp.zeros_like(acc_ref)

    def _accumulate():
        p = mel_p_ref[...].astype(jnp.float32)
        t = mel_t_ref[...].astype(jnp.float32)
        d = p - t
        dsq = d * d
        if need_mask:
            # Only the last REAL block is ragged; pay the iota/select there.
            @pl.when(gidx != total_blocks - 1)
            def _full():
                acc_ref[...] += jnp.sum(dsq, axis=0, keepdims=True)

            @pl.when(gidx == total_blocks - 1)
            def _ragged():
                row = (jax.lax.broadcasted_iota(jnp.int32, dsq.shape, 0)
                       + gidx * block_rows)
                acc_ref[...] += jnp.sum(
                    jnp.where(row < mel_rows, dsq, 0.0),
                    axis=0, keepdims=True)
        else:
            acc_ref[...] += jnp.sum(dsq, axis=0, keepdims=True)

    if has_dup:
        # When total_blocks is odd, core 1's last block index is clamped to a
        # duplicate of the last real block -> skip its contribution entirely.
        @pl.when(gidx < total_blocks)
        def _():
            _accumulate()
    else:
        _accumulate()

    # ---- per-core epilogue: finish mel partial, tiny losses, store row ----
    @pl.when(i == inner_blocks - 1)
    def _epilogue():
        def _small_mse(p_ref, t_ref, numel):
            pp = p_ref[...].astype(jnp.float32)
            tt = jnp.log1p(t_ref[...].astype(jnp.float32))
            dd = pp - tt
            return jnp.sum(dd * dd) * (1.0 / numel)

        mel_partial = jnp.sum(acc_ref[...])          # per-core sum of squares
        dur = _small_mse(dur_p_ref, len_t_ref, dur_numel)
        en = _small_mse(en_p_ref, en_t_ref, en_numel)
        pi = _small_mse(pi_p_ref, pi_t_ref, pi_numel)

        col = jax.lax.broadcasted_iota(jnp.int32, out_ref.shape, 1)
        vals = jnp.where(col == 0, mel_partial,
               jnp.where(col == 1, dur,
               jnp.where(col == 2, en,
               jnp.where(col == 3, pi, 0.0))))
        out_ref[...] = vals


def fastspeech2_loss(
    mel_output,
    duration_predictor_output,
    pitch_predictor_output,
    energy_predictor_output,
    mel_target,
    length_target,
    energy_target,
    pitch_target,
):
    """Pallas equivalent of FastSpeech2Loss.forward (mean-reduced MSE losses)."""
    n_mels = mel_output.shape[-1]
    mel_p2 = mel_output.reshape(-1, n_mels)      # metadata-only collapse
    mel_t2 = mel_target.reshape(-1, n_mels)
    rows = mel_p2.shape[0]

    def _as_2d(x):
        # Sublane-dense view for the tiny tensors when possible.
        n = x.size
        if n % 8 == 0:
            return x.reshape(8, n // 8)
        return x.reshape(1, n)

    dur_p2 = _as_2d(duration_predictor_output)
    len_t2 = _as_2d(length_target)
    en_p2 = _as_2d(energy_predictor_output)
    en_t2 = _as_2d(energy_target)
    pi_p2 = _as_2d(pitch_predictor_output)
    pi_t2 = _as_2d(pitch_target)

    # ~2 MiB per mel input per pipeline buffer (dtype-aware), sublane-aligned.
    # 2 inputs x 2 buffers x 2 MiB + f32 temps + resident tiny tensors stays
    # well under the explicit 32 MiB scoped limit on all generations.
    itemsize = jnp.dtype(mel_output.dtype).itemsize
    target_rows = max(8, ((2 << 20) // (n_mels * itemsize)) // 8 * 8)
    block_rows = rows if rows <= target_rows else target_rows
    total_blocks = pl.cdiv(rows, block_rows)

    num_cores = 2                                  # leading "parallel" axis
    inner_blocks = pl.cdiv(total_blocks, num_cores)
    has_dup = (num_cores * inner_blocks != total_blocks)
    need_mask = (rows % block_rows) != 0

    if has_dup:
        def mel_map(c, i):
            return (jnp.minimum(c * inner_blocks + i, total_blocks - 1), 0)
    else:
        def mel_map(c, i):
            return (c * inner_blocks + i, 0)

    def _resident(shape):
        # Whole tiny tensor resident in VMEM across the grid (constant index).
        return pl.BlockSpec(shape, lambda c, i: (0, 0))

    kernel = functools.partial(
        _fused_loss_kernel,
        block_rows=block_rows,
        inner_blocks=inner_blocks,
        total_blocks=total_blocks,
        mel_rows=rows,
        dur_numel=float(dur_p2.size),
        en_numel=float(en_p2.size),
        pi_numel=float(pi_p2.size),
        need_mask=need_mask,
        has_dup=has_dup,
    )

    out = pl.pallas_call(
        kernel,
        out_shape=jax.ShapeDtypeStruct((num_cores * 8, 128), jnp.float32),
        grid_spec=pltpu.PrefetchScalarGridSpec(
            num_scalar_prefetch=0,
            grid=(num_cores, inner_blocks),
            in_specs=[
                pl.BlockSpec((block_rows, n_mels), mel_map),
                pl.BlockSpec((block_rows, n_mels), mel_map),
                _resident(dur_p2.shape),
                _resident(len_t2.shape),
                _resident(en_p2.shape),
                _resident(en_t2.shape),
                _resident(pi_p2.shape),
                _resident(pi_t2.shape),
            ],
            out_specs=pl.BlockSpec((8, 128), lambda c, i: (c, 0)),
            scratch_shapes=[pltpu.VMEM((1, n_mels), jnp.float32)],
        ),
        compiler_params=pltpu.CompilerParams(
            dimension_semantics=("parallel", "arbitrary"),
            vmem_limit_bytes=32 * 1024 * 1024,
        ),
    )(mel_p2, mel_t2, dur_p2, len_t2, en_p2, en_t2, pi_p2, pi_t2)

    mel_numel = float(rows * n_mels)
    mel_loss = (out[0, 0] + out[8, 0]) * (1.0 / mel_numel)  # combine partials
    duration_loss = out[0, 1]
    energy_loss = out[0, 2]
    pitch_loss = out[0, 3]
    return mel_loss, duration_loss, energy_loss, pitch_loss


if __name__ == "__main__":
    key = jax.random.PRNGKey(0)
    k = jax.random.split(key, 8)

    B, T, N_MELS = 2, 8, 80  # FastSpeech2-typical mel width, small seq/batch

    mel_output = jax.random.normal(k[0], (B, T, N_MELS), jnp.float32)
    mel_target = jax.random.normal(k[1], (B, T, N_MELS), jnp.float32)

    duration_predictor_output = jax.random.normal(k[2], (B, T), jnp.float32)
    length_target = jax.random.randint(k[3], (B, T), 0, 10, jnp.int32)

    pitch_predictor_output = jax.random.normal(k[4], (B, T), jnp.float32)
    pitch_target = jax.random.uniform(k[5], (B, T), jnp.float32, 0.0, 5.0)

    energy_predictor_output = jax.random.normal(k[6], (B, T), jnp.float32)
    energy_target = jax.random.uniform(k[7], (B, T), jnp.float32, 0.0, 5.0)

    losses = fastspeech2_loss(
        mel_output,
        duration_predictor_output,
        pitch_predictor_output,
        energy_predictor_output,
        mel_target,
        length_target,
        energy_target,
        pitch_target,
    )
    losses = jax.block_until_ready(losses)

    # Reference check against plain JAX (same semantics as the torch module).
    ref = (
        jnp.mean((mel_output - mel_target) ** 2),
        jnp.mean(
            (duration_predictor_output
             - jnp.log1p(length_target.astype(jnp.float32))) ** 2
        ),
        jnp.mean((energy_predictor_output - jnp.log1p(energy_target)) ** 2),
        jnp.mean((pitch_predictor_output - jnp.log1p(pitch_target)) ** 2),
    )
    for got, want in zip(losses, ref):
        assert jnp.allclose(got, want, rtol=1e-5, atol=1e-5), (got, want)

    print("KERNEL_OK")
</pallas_src>

<mosaic_0001>
module attributes {stable_mosaic.version = 11 : i64} {
  func.func @_fused_loss_kernel(%arg0: i32, %arg1: i32, %arg2: memref<16x80xf32, #tpu.memory_space<vmem>>, %arg3: memref<16x80xf32, #tpu.memory_space<vmem>>, %arg4: memref<8x2xf32, #tpu.memory_space<vmem>>, %arg5: memref<8x2xi32, #tpu.memory_space<vmem>>, %arg6: memref<8x2xf32, #tpu.memory_space<vmem>>, %arg7: memref<8x2xf32, #tpu.memory_space<vmem>>, %arg8: memref<8x2xf32, #tpu.memory_space<vmem>>, %arg9: memref<8x2xf32, #tpu.memory_space<vmem>>, %arg10: memref<8x128xf32, #tpu.memory_space<vmem>>, %arg11: memref<1x80xf32, #tpu.memory_space<vmem>>) attributes {dimension_semantics = [#tpu.dimension_semantics<parallel>, #tpu.dimension_semantics<arbitrary>], iteration_bounds = array<i64: 2, 1>, scalar_prefetch = 0 : i64, scratch_operands = 1 : i64, tpu.core_type = #tpu.core_type<tc>, window_params = [{transform_indices = @transform_0, window_bounds = array<i64: 16, 80>}, {transform_indices = @transform_1, window_bounds = array<i64: 16, 80>}, {pipeline_mode = #tpu.pipeline_mode<synchronous>, transform_indices = @transform_2, window_bounds = array<i64: 8, 2>}, {pipeline_mode = #tpu.pipeline_mode<synchronous>, transform_indices = @transform_3, window_bounds = array<i64: 8, 2>}, {pipeline_mode = #tpu.pipeline_mode<synchronous>, transform_indices = @transform_4, window_bounds = array<i64: 8, 2>}, {pipeline_mode = #tpu.pipeline_mode<synchronous>, transform_indices = @transform_5, window_bounds = array<i64: 8, 2>}, {pipeline_mode = #tpu.pipeline_mode<synchronous>, transform_indices = @transform_6, window_bounds = array<i64: 8, 2>}, {pipeline_mode = #tpu.pipeline_mode<synchronous>, transform_indices = @transform_7, window_bounds = array<i64: 8, 2>}, {transform_indices = @transform_8, window_bounds = array<i64: 8, 128>}]} {
    %c1_i32 = arith.constant 1 : i32
    %0 = arith.muli %arg0, %c1_i32 : i32
    %1 = arith.addi %0, %arg1 : i32
    %c0_i32 = arith.constant 0 : i32
    %2 = arith.cmpi eq, %arg1, %c0_i32 : i32
    %3 = arith.extui %2 : i1 to i32
    %c0_i32_0 = arith.constant 0 : i32
    %4 = arith.cmpi ne, %3, %c0_i32_0 : i32
    scf.if %4 {
      %cst = arith.constant 0.000000e+00 : f32
      %11 = vector.broadcast %cst : f32 to vector<1x80xf32>
      %c0 = arith.constant 0 : index
      %c0_5 = arith.constant 0 : index
      %12 = vector.load %arg11[%c0, %c0_5] : memref<1x80xf32, #tpu.memory_space<vmem>>, vector<1x80xf32>
      tpu.vector_store %arg11[%c0, %c0_5], %11 {strides = array<i32>} : memref<1x80xf32, #tpu.memory_space<vmem>>, vector<1x80xf32>,
    } else {
    }
    %c1_i32_1 = arith.constant 1 : i32
    %5 = arith.cmpi slt, %1, %c1_i32_1 : i32
    %6 = arith.extui %5 : i1 to i32
    %c0_i32_2 = arith.constant 0 : i32
    %7 = arith.cmpi ne, %6, %c0_i32_2 : i32
    scf.if %7 {
      %c0 = arith.constant 0 : index
      %c0_5 = arith.constant 0 : index
      %11 = vector.load %arg2[%c0, %c0_5] : memref<16x80xf32, #tpu.memory_space<vmem>>, vector<16x80xf32>
      %c0_6 = arith.constant 0 : index
      %c0_7 = arith.constant 0 : index
      %12 = vector.load %arg3[%c0_6, %c0_7] : memref<16x80xf32, #tpu.memory_space<vmem>>, vector<16x80xf32>
      %13 = arith.subf %11, %12 : vector<16x80xf32>
      %14 = arith.mulf %13, %13 : vector<16x80xf32>
      %c0_8 = arith.constant 0 : index
      %c0_9 = arith.constant 0 : index
      %15 = vector.load %arg11[%c0_8, %c0_9] : memref<1x80xf32, #tpu.memory_space<vmem>>, vector<1x80xf32>
      %cst = arith.constant dense<0.000000e+00> : vector<80xf32>
      %16 = vector.multi_reduction <add>, %14, %cst [0] : vector<16x80xf32> to vector<80xf32>
      %17 = vector.shape_cast %16 : vector<80xf32> to vector<1x80xf32>
      %18 = arith.addf %15, %17 : vector<1x80xf32>
      %c0_10 = arith.constant 0 : index
      %c0_11 = arith.constant 0 : index
      %19 = vector.load %arg11[%c0_10, %c0_11] : memref<1x80xf32, #tpu.memory_space<vmem>>, vector<1x80xf32>
      tpu.vector_store %arg11[%c0_10, %c0_11], %18 {strides = array<i32>} : memref<1x80xf32, #tpu.memory_space<vmem>>, vector<1x80xf32>,
    } else {
    }
    %c0_i32_3 = arith.constant 0 : i32
    %8 = arith.cmpi eq, %arg1, %c0_i32_3 : i32
    %9 = arith.extui %8 : i1 to i32
    %c0_i32_4 = arith.constant 0 : i32
    %10 = arith.cmpi ne, %9, %c0_i32_4 : i32
    scf.if %10 {
      %c0 = arith.constant 0 : index
      %c0_5 = arith.constant 0 : index
      %11 = vector.load %arg11[%c0, %c0_5] : memref<1x80xf32, #tpu.memory_space<vmem>>, vector<1x80xf32>
      %12 = vector.shape_cast %11 : vector<1x80xf32> to vector<1x1x80xf32>
      %cst = arith.constant dense<0.000000e+00> : vector<1xf32>
      %13 = vector.multi_reduction <add>, %12, %cst [1, 2] : vector<1x1x80xf32> to vector<1xf32>
      %14 = vector.shape_cast %13 : vector<1xf32> to vector<1x1x1xf32>
      %15 = vector.extract %14[0, 0, 0] : f32 from vector<1x1x1xf32>
      %c0_6 = arith.constant 0 : index
      %c0_7 = arith.constant 0 : index
      %16 = vector.load %arg4[%c0_6, %c0_7] : memref<8x2xf32, #tpu.memory_space<vmem>>, vector<8x2xf32>
      %c0_8 = arith.constant 0 : index
      %c0_9 = arith.constant 0 : index
      %17 = vector.load %arg5[%c0_8, %c0_9] : memref<8x2xi32, #tpu.memory_space<vmem>>, vector<8x2xi32>
      %18 = arith.sitofp %17 : vector<8x2xi32> to vector<8x2xf32>
      %19 = math.log1p %18 : vector<8x2xf32>
      %20 = arith.subf %16, %19 : vector<8x2xf32>
      %21 = arith.mulf %20, %20 : vector<8x2xf32>
      %22 = vector.shape_cast %21 : vector<8x2xf32> to vector<1x8x2xf32>
      %cst_10 = arith.constant dense<0.000000e+00> : vector<1xf32>
      %23 = vector.multi_reduction <add>, %22, %cst_10 [1, 2] : vector<1x8x2xf32> to vector<1xf32>
      %24 = vector.shape_cast %23 : vector<1xf32> to vector<1x1x1xf32>
      %25 = vector.extract %24[0, 0, 0] : f32 from vector<1x1x1xf32>
      %cst_11 = arith.constant 6.250000e-02 : f32
      %26 = arith.mulf %25, %cst_11 : f32
      %c0_12 = arith.constant 0 : index
      %c0_13 = arith.constant 0 : index
      %27 = vector.load %arg6[%c0_12, %c0_13] : memref<8x2xf32, #tpu.memory_space<vmem>>, vector<8x2xf32>
      %c0_14 = arith.constant 0 : index
      %c0_15 = arith.constant 0 : index
      %28 = vector.load %arg7[%c0_14, %c0_15] : memref<8x2xf32, #tpu.memory_space<vmem>>, vector<8x2xf32>
      %29 = math.log1p %28 : vector<8x2xf32>
      %30 = arith.subf %27, %29 : vector<8x2xf32>
      %31 = arith.mulf %30, %30 : vector<8x2xf32>
      %32 = vector.shape_cast %31 : vector<8x2xf32> to vector<1x8x2xf32>
      %cst_16 = arith.constant dense<0.000000e+00> : vector<1xf32>
      %33 = vector.multi_reduction <add>, %32, %cst_16 [1, 2] : vector<1x8x2xf32> to vector<1xf32>
      %34 = vector.shape_cast %33 : vector<1xf32> to vector<1x1x1xf32>
      %35 = vector.extract %34[0, 0, 0] : f32 from vector<1x1x1xf32>
      %cst_17 = arith.constant 6.250000e-02 : f32
      %36 = arith.mulf %35, %cst_17 : f32
      %c0_18 = arith.constant 0 : index
      %c0_19 = arith.constant 0 : index
      %37 = vector.load %arg8[%c0_18, %c0_19] : memref<8x2xf32, #tpu.memory_space<vmem>>, vector<8x2xf32>
      %c0_20 = arith.constant 0 : index
      %c0_21 = arith.constant 0 : index
      %38 = vector.load %arg9[%c0_20, %c0_21] : memref<8x2xf32, #tpu.memory_space<vmem>>, vector<8x2xf32>
      %39 = math.log1p %38 : vector<8x2xf32>
      %40 = arith.subf %37, %39 : vector<8x2xf32>
      %41 = arith.mulf %40, %40 : vector<8x2xf32>
      %42 = vector.shape_cast %41 : vector<8x2xf32> to vector<1x8x2xf32>
      %cst_22 = arith.constant dense<0.000000e+00> : vector<1xf32>
      %43 = vector.multi_reduction <add>, %42, %cst_22 [1, 2] : vector<1x8x2xf32> to vector<1xf32>
      %44 = vector.shape_cast %43 : vector<1xf32> to vector<1x1x1xf32>
      %45 = vector.extract %44[0, 0, 0] : f32 from vector<1x1x1xf32>
      %cst_23 = arith.constant 6.250000e-02 : f32
      %46 = arith.mulf %45, %cst_23 : f32
      %47 = tpu.iota {dimensions = array<i32: 1>} : vector<8x128xi32>
      %c0_i32_24 = arith.constant 0 : i32
      %48 = vector.broadcast %c0_i32_24 : i32 to vector<8x128xi32>
      %49 = arith.cmpi eq, %47, %48 : vector<8x128xi32>
      %c1_i32_25 = arith.constant 1 : i32
      %50 = vector.broadcast %c1_i32_25 : i32 to vector<8x128xi32>
      %51 = arith.cmpi eq, %47, %50 : vector<8x128xi32>
      %c2_i32 = arith.constant 2 : i32
      %52 = vector.broadcast %c2_i32 : i32 to vector<8x128xi32>
      %53 = arith.cmpi eq, %47, %52 : vector<8x128xi32>
      %c3_i32 = arith.constant 3 : i32
      %54 = vector.broadcast %c3_i32 : i32 to vector<8x128xi32>
      %55 = arith.cmpi eq, %47, %54 : vector<8x128xi32>
      %cst_26 = arith.constant 0.000000e+00 : f32
      %56 = vector.broadcast %46 : f32 to vector<8x128xf32>
      %57 = vector.broadcast %cst_26 : f32 to vector<8x128xf32>
      %58 = arith.select %55, %56, %57 : vector<8x128xi1>, vector<8x128xf32>
      %59 = vector.broadcast %36 : f32 to vector<8x128xf32>
      %60 = arith.select %53, %59, %58 : vector<8x128xi1>, vector<8x128xf32>
      %61 = vector.broadcast %26 : f32 to vector<8x128xf32>
      %62 = arith.select %51, %61, %60 : vector<8x128xi1>, vector<8x128xf32>
      %63 = vector.broadcast %15 : f32 to vector<8x128xf32>
      %64 = arith.select %49, %63, %62 : vector<8x128xi1>, vector<8x128xf32>
      %c0_27 = arith.constant 0 : index
      %c0_28 = arith.constant 0 : index
      %65 = vector.load %arg10[%c0_27, %c0_28] : memref<8x128xf32, #tpu.memory_space<vmem>>, vector<8x128xf32>
      tpu.vector_store %arg10[%c0_27, %c0_28], %64 {strides = array<i32>} : memref<8x128xf32, #tpu.memory_space<vmem>>, vector<8x128xf32>,
    } else {
    }
    return
  }
  func.func @transform_0(%arg0: i32, %arg1: i32) -> (i32, i32) {
    %c1_i32 = arith.constant 1 : i32
    %0 = arith.muli %arg0, %c1_i32 : i32
    %1 = arith.addi %0, %arg1 : i32
    %c0_i32 = arith.constant 0 : i32
    %2 = arith.minsi %1, %c0_i32 : i32
    %c0_i32_0 = arith.constant 0 : i32
    %c0_i32_1 = arith.constant 0 : i32
    return %2, %c0_i32_0 : i32, i32
  }
  func.func @transform_1(%arg0: i32, %arg1: i32) -> (i32, i32) {
    %c1_i32 = arith.constant 1 : i32
    %0 = arith.muli %arg0, %c1_i32 : i32
    %1 = arith.addi %0, %arg1 : i32
    %c0_i32 = arith.constant 0 : i32
    %2 = arith.minsi %1, %c0_i32 : i32
    %c0_i32_0 = arith.constant 0 : i32
    %c0_i32_1 = arith.constant 0 : i32
    return %2, %c0_i32_0 : i32, i32
  }
  func.func @transform_2(%arg0: i32, %arg1: i32) -> (i32, i32) {
    %c0_i32 = arith.constant 0 : i32
    %c0_i32_0 = arith.constant 0 : i32
    %c0_i32_1 = arith.constant 0 : i32
    return %c0_i32, %c0_i32_0 : i32, i32
  }
  func.func @transform_3(%arg0: i32, %arg1: i32) -> (i32, i32) {
    %c0_i32 = arith.constant 0 : i32
    %c0_i32_0 = arith.constant 0 : i32
    %c0_i32_1 = arith.constant 0 : i32
    return %c0_i32, %c0_i32_0 : i32, i32
  }
  func.func @transform_4(%arg0: i32, %arg1: i32) -> (i32, i32) {
    %c0_i32 = arith.constant 0 : i32
    %c0_i32_0 = arith.constant 0 : i32
    %c0_i32_1 = arith.constant 0 : i32
    return %c0_i32, %c0_i32_0 : i32, i32
  }
  func.func @transform_5(%arg0: i32, %arg1: i32) -> (i32, i32) {
    %c0_i32 = arith.constant 0 : i32
    %c0_i32_0 = arith.constant 0 : i32
    %c0_i32_1 = arith.constant 0 : i32
    return %c0_i32, %c0_i32_0 : i32, i32
  }
  func.func @transform_6(%arg0: i32, %arg1: i32) -> (i32, i32) {
    %c0_i32 = arith.constant 0 : i32
    %c0_i32_0 = arith.constant 0 : i32
    %c0_i32_1 = arith.constant 0 : i32
    return %c0_i32, %c0_i32_0 : i32, i32
  }
  func.func @transform_7(%arg0: i32, %arg1: i32) -> (i32, i32) {
    %c0_i32 = arith.constant 0 : i32
    %c0_i32_0 = arith.constant 0 : i32
    %c0_i32_1 = arith.constant 0 : i32
    return %c0_i32, %c0_i32_0 : i32, i32
  }
  func.func @transform_8(%arg0: i32, %arg1: i32) -> (i32, i32) {
    %c0_i32 = arith.constant 0 : i32
    %c0_i32_0 = arith.constant 0 : i32
    return %arg0, %c0_i32 : i32, i32
  }
}

</mosaic_0001>

<bundles_post_ra>
// kernel: tpu_custom_call.1
= control target key start
LH: loop header
LB: loop body
LE: loop exit
PB: predicated region body
PF: predicated region fallthrough
CT: control target
= control target key end

     0   :  { %13 = vsyncpa [#allocation4], 0  ;;  %s972_s0 = inlined_call_operand.vmem [shape: f32[16,80], index: 0, kind: input, shape index: {}]   ;;  %s973_s1 = inlined_call_operand.vmem [shape: f32[16,80], index: 1, kind: input, shape index: {}]   ;;  %s974_s2 = inlined_call_operand.vmem [shape: f32[8,2], index: 2, kind: input, shape index: {}]   ;;  %s975_s3 = inlined_call_operand.vmem [shape: s32[8,2], index: 3, kind: input, shape index: {}]   ;;  %s976_s4 = inlined_call_operand.vmem [shape: f32[8,2], index: 4, kind: input, shape index: {}]   ;;  %s977_s5 = inlined_call_operand.vmem [shape: f32[8,2], index: 5, kind: input, shape index: {}]   ;;  %s978_s6 = inlined_call_operand.vmem [shape: f32[8,2], index: 6, kind: input, shape index: {}]   ;;  %s979_s7 = inlined_call_operand.vmem [shape: f32[8,2], index: 7, kind: input, shape index: {}]   ;;  %s980_s8 = inlined_call_operand.hbm [shape: f32[16,128], index: 8, kind: output, shape index: {}]  }
   0x1   :  { %15 = vsyncpa [#allocation4 + $0x1], 0  ;;  %s824_s27 = smov 0   ;;  %s826_s28 = smov 0  }
   0x2   :  { %s828_s29 = smov 0   ;;  %s830_s30 = smov 0  }
   0x3   :  { %s832_s9 = smov 0   ;;  %s834_s10 = smov 0  }
   0x4 LB: > { %s612_s11 = sadd.s32 4294967295, %s775_s10   ;;  %s613_s12 = sadd.s32 4294967294, %s775_s10   ;;  %s775_s10 = sphi %s834_s10, %s21_s10   ;;  %s771_s9 = sphi %s832_s9, %s987_s9   ;;  %s767_s30 = sphi %s830_s30, %s986_s30   ;;  %s763_s29 = sphi %s828_s29, %s985_s29   ;;  %s759_s28 = sphi %s826_s28, %s984_s28   ;;  %s755_s27 = sphi %s824_s27, %s983_s27  }
   0x5   : > { %s33_s13 = sadd.s32 1, %s771_s9  ;;  %s230_s14 = sadd.s32 1, %s763_s29 }
   0x6   : > { %p35_p0 = scmp.ge.s32.totalorder %s33_s13, 2  ;;  %p240_p1 = scmp.ne.s32.totalorder %s763_s29, %s759_s28 }
   0x7   : > { %p241_p2 = scmp.eq.s32.totalorder %s612_s11, 1  ;;  %p246_p3 = scmp.ne.s32.totalorder %s759_s28, %s755_s27 }
   0x8   : > { %s989_s13 = smov (%p35_p0, %s33_s13), 0  ;;  %p247_p5 = scmp.eq.s32.totalorder %s613_s12, 1 }
   0x9   : > { %p864_p4 = por %p241_p2, %p240_p1  ;;  %s227_s16 = ssub.s32 %s771_s9, %s989_s13 }
   0xa   : > { %p616_p6 = scmp.ge.s32.totalorder %s775_s10, 1  ;;  %p228_p7 = scmp.eq.s32.totalorder %s227_s16, 0 }
   0xb   : > { %p871_p8 = por %p247_p5, %p246_p3  ;;  %p313_p9 = scmp.lt.s32.totalorder %s775_s10, 3 }
   0xc   : > { %s877_s18 = scalar_select %p228_p7, %s763_s29, %s230_s14  }
   0xd   : > { %p314_p10 = pnand %p616_p6, %p313_p9 }
   0xe   : > { %s355_s19 = sand.u32 (!%p314_p10), 1, %s759_s28   ;;  %p359_p11 = scmp.lt.s32.totalorder (!%p314_p10), %s767_s30, 0  ;;  %vm387_vm0 = vcmask (!%p314_p10), 647168   ;;  %v777_v0 = vmov (!%p314_p10), 0.0  }
   0xf   : > { %317 = sbr.rel (%p314_p10) target bundleno = 308 (0x134), region = 52  ;;  %s883_s20 = sshll.u32 (!%p314_p10), %s355_s19, 3  ;;  %388 = vst.msk [vmem:[#allocation2] sm:$0x1] (!%p314_p10), %vm387_vm0, %v777_v0 }
  0x10   : > { %s357_s16 = scalar_lea.vmem (!%p314_p10), [#allocation3], %s883_s20  ;;  %p622_p13 = scmp.ge.s32.totalorder (!%p314_p10), %s767_s30, 1 }
  0x16   : > { %s360_s21 = scalar_select %p359_p11, %s767_s30, 0 }
  0x17   : > { %392 = sbr.rel (%p622_p13) target bundleno = 54 (0x36), region = 60  ;;  %vm402_vm1 = vcmask (!%p622_p13), 654336   ;;  %v401_v17 = vld [vmem:[#allocation2] sm:$0x1] (!%p622_p13) }
  0x18   : > { %s618_s22 = sshll.u32 %s360_s21, 1 }
  0x19   : > { %p362_p12 = scmp.lt.s32.totalorder %s618_s22, 1 }
  0x1b   : > { %s991_s22 = smov (!%p362_p12, %s618_s22), 1 }
  0x1c   : > { %s619_s23 = sshll.u32 %s991_s22, 3 }
  0x1d   : > { %s365_s26 = scalar_lea.vmem %s972_s0, %s619_s23  ;;  %s377_s14 = scalar_lea.vmem %s973_s1, %s619_s23 }
  0x1e   : > { %v393_v1 = vld [vmem:[%s365_s26] sm:$0xff]  ;;  %v394_v2 = vld [vmem:[%s365_s26 + $0x8] sm:$0xff] }
  0x1f   : > { %v395_v3 = vld [vmem:[%s377_s14] sm:$0xff]  ;;  %v396_v4 = vld [vmem:[%s377_s14 + $0x8] sm:$0xff] }
  0x20   : > { %v397_v5 = vsub.f32 %v393_v1, %v395_v3  ;;  %v398_v6 = vsub.f32 %v394_v2, %v396_v4 }
  0x22   : > { %v399_v7 = vmul.f32 %v397_v5, %v397_v5  ;;  %v400_v8 = vmul.f32 %v398_v6, %v398_v6 }
  0x24   : > { %v403_v9 = vsel %vm402_vm1, %v399_v7, 0.0  ;;  %v404_v10 = vsel %vm402_vm1, %v400_v8, 0.0 }
  0x25   : > { %v405_v11 = vadd.f32 %v404_v10, %v403_v9 }
  0x27   : > { %v406_v12 = vrot.slane %v405_v11, 4 }
  0x29   : > { %v407_v13 = vadd.f32 %v406_v12, %v405_v11 }
  0x2b   : > { %v408_v14 = vrot.slane %v407_v13, 2 }
  0x2d   : > { %v409_v15 = vadd.f32 %v408_v14, %v407_v13 }
  0x2f   : > { %v410_v16 = vrot.slane %v409_v15, 1 }
  0x31   : > { %v411_v18 = vadd.f32 %v410_v16, %v409_v15 }
  0x33   : > { %v412_v19 = vadd.f32 %v411_v18, %v401_v17 }
  0x35   : > { %414 = vst.msk [vmem:[#allocation2] sm:$0x1] %vm387_vm0, %v412_v19 }
  0x36 PF: > { %v457_v21 = vld [vmem:[%s977_s5] sm:$0xff]  ;;  %vm444_vm5 = vcmask 15360   ;;  %s624_s22 = sshll.u32 %s767_s30, 7  ;;  %s533_s23 = sshll.u32 %s357_s16, 4  ;;  %s923_s23 = int_to_ptr.vmem [resolvable:$true] %s533_s23 }
  0x37   : > { %v458_v23 = vadd.f32 1.0, %v457_v21  ;;  %v431_v24 = vld [vmem:[%s975_s3] sm:$0xff]  ;;  %v461_v27 = vmul.f32 -0.5, %v457_v21  ;;  %v464_v33 = vand.u32 2147483647, %v457_v21  ;;  %s520_s30 = scalar_lea.sflag [#allocation4], %s355_s19 }
  0x38   : > { %v481_v25 = vld [vmem:[%s979_s7] sm:$0xff]  ;;  %v432_v26 = vcvt.s32.f32 %v431_v24 }
  0x39   : > { %691 = vlog2.f32 %v458_v23  ;;  %v482_v28 = vadd.f32 1.0, %v481_v25  ;;  %v485_v30 = vmul.f32 -0.5, %v481_v25  ;;  %v462_v31 = vadd.f32 1.0, %v461_v27  ;;  %v456_v40 = vld [vmem:[%s976_s4] sm:$0xff] }
  0x3a   : > { %v433_v29 = vadd.f32 1.0, %v432_v26  ;;  %v436_v32 = vmul.f32 -0.5, %v432_v26  ;;  %v488_v37 = vand.u32 2147483647, %v481_v25  ;;  %vm465_vm2 = vcmp.lt.f32.partialorder %v464_v33, 0.0004427343 }
  0x3b   : > { %693 = vlog2.f32 %v482_v28  ;;  %v486_v34 = vadd.f32 1.0, %v485_v30  ;;  %v463_v35 = vmul.f32 %v462_v31, %v457_v21  ;;  %v439_v39 = vand.u32 2147483647, %v432_v26  ;;  %v480_v48 = vld [vmem:[%s978_s6] sm:$0xff] }
  0x3c   : > { %v418_v20 = vld [vmem:[#allocation2] sm:$0x1]  ;;  %695 = vlog2.f32 %v433_v29  ;;  %v437_v36 = vadd.f32 1.0, %v436_v32  ;;  %vm489_vm3 = vcmp.lt.f32.partialorder %v488_v37, 0.0004427343 }
  0x3d   : > { %v420_v22 = vsel %vm387_vm0, %v418_v20, 0.0  ;;  %v487_v42 = vmul.f32 %v486_v34, %v481_v25  ;;  %vm440_vm4 = vcmp.lt.f32.partialorder %v439_v39, 0.0004427343  ;;  %v430_v50 = vld [vmem:[%s974_s2] sm:$0xff] }
  0x3e   : > { %421 = vadd.xlane.f32.xlu0 %v420_v22  ;;  %v438_v45 = vmul.f32 %v437_v36, %v432_v26  ;;  %v504_v26 = vlaneseq }
  0x40   : > { %v505_v27 = vand.u32 127, %v504_v26 }
  0x42   : > { %vm509_vm6 = vcmp.eq.s32.totalorder %v505_v27, 3  ;;  %vm508_vm7 = vcmp.eq.s32.totalorder %v505_v27, 2  ;;  %vm507_vm8 = vcmp.eq.s32.totalorder %v505_v27, 1  ;;  %vm506_vm9 = vcmp.eq.s32.totalorder %v505_v27, 0 }
  0x43   : > { %v692_v38 = vpop.eup %691 }
  0x44   : > { %v460_v41 = vmul.f32 0.6931472, %v692_v38 }
  0x45   : > { %v694_v43 = vpop.eup %693 }
  0x46   : > { %v466_v44 = vsel %vm465_vm2, %v463_v35, %v460_v41  ;;  %v696_v46 = vpop.eup %695  ;;  %v484_v49 = vmul.f32 0.6931472, %v694_v43 }
  0x47   : > { %v467_v47 = vsub.f32 %v456_v40, %v466_v44  ;;  %v435_v51 = vmul.f32 0.6931472, %v696_v46 }
  0x48   : > { %v490_v53 = vsel %vm489_vm3, %v487_v42, %v484_v49 }
  0x49   : > { %v468_v52 = vmul.f32 %v467_v47, %v467_v47  ;;  %v441_v54 = vsel %vm440_vm4, %v438_v45, %v435_v51  ;;  %v491_v55 = vsub.f32 %v480_v48, %v490_v53 }
  0x4a   : > { %v442_v57 = vsub.f32 %v430_v50, %v441_v54 }
  0x4b   : > { %v469_v56 = vsel %vm444_vm5, %v468_v52, 0.0  ;;  %v492_v58 = vmul.f32 %v491_v55, %v491_v55 }
  0x4c   : > { %470 = vadd.xlane.f32.xlu1 %v469_v56  ;;  %v443_v59 = vmul.f32 %v442_v57, %v442_v57 }
  0x4d   : > { %v493_v60 = vsel %vm444_vm5, %v492_v58, 0.0 }
  0x4e   : > { %v445_v61 = vsel %vm444_vm5, %v443_v59, 0.0 }
  0x4f   : > { %446 = vadd.xlane.f32.xlu0 %v445_v61 }
  0x50   : > { %494 = vadd.xlane.f32.xlu1 %v493_v60 }
  0xcb   : > { %v422_v62 = vpop.xlane.xlu0 %421 }
  0xcc   : > { %v423_v63 = vrot.slane %v422_v62, 4 }
  0xce   : > { %v424_v0 = vadd.f32 %v423_v63, %v422_v62 }
  0xd0   : > { %v425_v1 = vrot.slane %v424_v0, 2 }
  0xd2   : > { %v426_v2 = vadd.f32 %v425_v1, %v424_v0 }
  0xd4   : > { %v427_v3 = vrot.slane %v426_v2, 1 }
  0xd6   : > { %v428_v4 = vadd.f32 %v427_v3, %v426_v2 }
  0xd8   : > { %627 = vpush %v428_v4 }
  0xd9   : > { %v471_v5 = vpop.xlane.xlu1 %470 }
  0xda   : > { %v472_v6 = vrot.slane %v471_v5, 4 }
  0xdc   : > { %v473_v7 = vadd.f32 %v472_v6, %v471_v5  ;;  %v447_v8 = vpop.xlane.xlu0 %446 }
  0xdd   : > { %v495_v9 = vpop.xlane.xlu1 %494  ;;  %v448_v11 = vrot.slane %v447_v8, 4 }
  0xde   : > { %v474_v10 = vrot.slane %v473_v7, 2  ;;  %v496_v12 = vrot.slane %v495_v9, 4 }
  0xdf   : > { %v449_v13 = vadd.f32 %v448_v11, %v447_v8 }
  0xe0   : > { %v497_v14 = vadd.f32 %v496_v12, %v495_v9  ;;  %v475_v15 = vadd.f32 %v474_v10, %v473_v7 }
  0xe1   : > { %v450_v16 = vrot.slane %v449_v13, 2 }
  0xe2   : > { %v498_v17 = vrot.slane %v497_v14, 2  ;;  %v476_v20 = vrot.slane %v475_v15, 1 }
  0xe3   : > { %v451_v18 = vadd.f32 %v450_v16, %v449_v13 }
  0xe4   : > { %v499_v19 = vadd.f32 %v498_v17, %v497_v14  ;;  %v477_v25 = vadd.f32 %v476_v20, %v475_v15 }
  0xe5   : > { %v452_v21 = vrot.slane %v451_v18, 1 }
  0xe6   : > { %v500_v22 = vrot.slane %v499_v19, 1 }
  0xe7   : > { %v453_v23 = vadd.f32 %v452_v21, %v451_v18 }
  0xe8   : > { %v501_v24 = vadd.f32 %v500_v22, %v499_v19 }
  0xe9   : > { %629 = vpush %v453_v23 }
  0xea   : > { %631 = vpush %v477_v25 }
  0xeb   : > { %633 = vpush %v501_v24 }
 0x109   : > { %s628_s24 = spop %627 }
 0x10a   : > { %v516_v33 = vstv %s628_s24  ;;  %s778_s24 = smov [#allocation3]  }
 0x11a   : > { %s630_s25 = spop %629 }
 0x11b   : > { %s455_s26 = smul.f32 0.0625, %s630_s25  ;;  %s632_s11 = spop %631 }
 0x11c   : > { %s479_s12 = smul.f32 0.0625, %s632_s11  ;;  %s634_s14 = spop %633 }
 0x11d   : > { %s503_s21 = smul.f32 0.0625, %s634_s14  ;;  %v514_v31 = vstv %s455_s26  ;;  %s921_s14 = scalar_lea.hbm %s980_s8, %s624_s22 }
 0x11e   : > { %v512_v29 = vstv %s479_s12  ;;  %s697_s12 = scalar_lea.vmem %s923_s23, 128  ;;  %s701_s26 = sshll.u32 %s778_s24, 4  ;;  %s702_s26 = int_to_ptr.vmem [resolvable:$false] %s701_s26 }
 0x11f   : > { %v510_v28 = vstv %s503_s21  ;;  %p698_p0 = scmp.ne.s32.totalorder %s923_s23, %s697_s12  ;;  %s703_s21 = scalar_lea.vmem %s702_s26, 256 }
 0x120   : > { %v511_v30 = vsel %vm509_vm6, %v510_v28, 0.0  ;;  %p704_p3 = scmp.lt.s32.totalorder %s923_s23, %s702_s26  ;;  %p705_p5 = scmp.lt.s32.totalorder %s703_s21, %s697_s12 }
 0x121   : > { %v513_v32 = vsel %vm508_vm7, %v512_v29, %v511_v30  ;;  %p699_p1 = pnand %p698_p0, %p864_p4 }
 0x122   : > { %v515_v34 = vsel %vm507_vm8, %v514_v31, %v513_v32  ;;  %p706_p6 = por %p705_p5, %p704_p3 }
 0x123   : > { %v517_v35 = vsel %vm506_vm9, %v516_v33, %v515_v34  ;;  %p700_p2 = pneg %p699_p1 }
 0x124   : > { %518 = vst [vmem:[%s357_s16] sm:$0xff] %v517_v35 }
 0x125   : > { %p707_p7 = pnand %p706_p6, %p700_p2 }
 0x127   : > { %710 = shalt.err (!%p707_p7)
}
 0x128   : > { %s711_s19 = scalar_lea.hbm %s921_s14, 128  ;;  %s715_s22 = scalar_lea.hbm %s980_s8, 256 }
 0x129   : > { %p712_p9 = scmp.ne.s32.totalorder %s921_s14, %s711_s19  ;;  %p716_p12 = scmp.lt.u32.totalorder %s921_s14, %s980_s8 }
 0x12a   : > { %p717_p13 = scmp.lt.u32.totalorder %s715_s22, %s711_s19  ;;  %p719_p1 = scmp.lt.u32.totalorder %s711_s19, %s921_s14 }
 0x12b   : > { %p713_p10 = pnand %p712_p9, %p864_p4 }
 0x12c   : > { %p718_p0 = por %p717_p13, %p716_p12 }
 0x12d   : > { %p714_p11 = pneg %p713_p10 }
 0x12e   : > { %p720_p2 = por %p719_p1, %p718_p0 }
 0x130   : > { %p721_p3 = pnand %p720_p2, %p714_p11 }
 0x132   : > { %724 = shalt.err (!%p721_p3)
}
 0x133   : > { %635 = dma.vmem_to_hbm [thread:$0]  (%p864_p4), %s923_s23, 128, %s921_s14, %s520_s30  }
 0x134 PF: > { %p641_p5 = scmp.ge.s32.totalorder %s775_s10, 2  ;;  %s545_s12 = sand.u32 1, %s755_s27  }
 0x135   : > { %s546_s24 = scalar_lea.sflag [#allocation4], %s545_s12 }
 0x136   : > { %p638_p6 = pnand %p641_p5, %p871_p8 }
 0x138   : > { %750 = dma.done.wait (!%p638_p6), %s546_s24, 128  }
 0x139   : > { %752 = vsyncadd (!%p638_p6), %s546_s24, 4294967168  ;;  %s21_s10 = sadd.s32 1, %s775_s10   ;;  %s983_s27 = smov %s759_s28 }
 0x13a   : > { %p18_p7 = scmp.ge.s32.totalorder %s21_s10, 4   ;;  %s984_s28 = smov %s763_s29 }
 0x13b   : > { %s985_s29 = smov %s877_s18  ;;  %s986_s30 = smov %s771_s9 }
 0x13c   : > { %s987_s9 = smov %s989_s13  ;;  %20 = sbr.rel (!%p18_p7) target bundleno = 4 (0x4), region = 102 }
 0x143   :  { %551 = vsyncpa [#allocation4], 1 }
 0x144   :  { %553 = vsyncpa [#allocation4 + $0x1], 1 }

</bundles_post_ra>
